<compile_context>
chip_gen: v6e
topology: v6e:2x2x1
jax: 0.10.0
libtpu: 0.0.40
codegen_flags: <defaults>
</compile_context>

<pallas_src>
import functools
import math

import jax
import jax.numpy as jnp
from jax.experimental import pallas as pl
from jax.experimental.pallas import tpu as pltpu


HID_P = 128    # padded hidden width (64 -> 128 lanes)
OUT_P = 128    # padded output width (10 -> 128 lanes)


def _round_up(x, m):
    return ((x + m - 1) // m) * m


def _ceil_div(a, b):
    return (a + b - 1) // b


# ----------------------------------------------------------------------------
# Pallas kernel: fused MLP forward on one batch tile.
#   h1     = x @ W1 + b1          (RobustLinear(784, 64), L2 norm -> plain linear)
#   logits = h1 @ W2 + b2         (RobustLinear(64, 10))
#   logp   = log_softmax(logits, axis=1)
# Outputs: h1 (bf16, padded to 128 lanes), logp (f32, padded), lse = m + logsumexp
# (f32, one column) so the wrapper can reconstruct logits = logp + lse.
# ----------------------------------------------------------------------------
def _net_fwd_kernel(x_ref, w1_ref, b1_ref, w2_ref, b2_ref,
                    h1_ref, logp_ref, lse_ref, *, out_f):
    x = x_ref[...]                                                    # (TB, 784) bf16

    # fc1: MXU matmul (bf16 in, f32 accumulate), bias add on the VPU in f32.
    h1 = jnp.dot(x, w1_ref[...], preferred_element_type=jnp.float32)  # (TB, 128)
    h1 = h1 + b1_ref[...]
    h1_bf = h1.astype(jnp.bfloat16)
    h1_ref[...] = h1_bf                                               # bf16, lane-dense

    # fc2 (consumes the same bf16 value that was stored, keeping zs[1] consistent)
    logits = jnp.dot(h1_bf, w2_ref[...],
                     preferred_element_type=jnp.float32)              # (TB, 128)
    logits = logits + b2_ref[...]

    # Numerically-stable log_softmax along dim=1, padded lanes masked out (f32).
    lane = jax.lax.broadcasted_iota(jnp.int32, logits.shape, 1)
    masked = jnp.where(lane < out_f, logits, jnp.float32(-1e30))
    m = jnp.max(masked, axis=-1, keepdims=True)                       # (TB, 1)
    shifted = masked - m
    lse = jnp.log(jnp.sum(jnp.exp(shifted), axis=-1, keepdims=True))  # (TB, 1)
    logp_ref[...] = shifted - lse
    lse_ref[...] = m + lse          # logits = logp + (m + lse) on valid lanes


# ----------------------------------------------------------------------------
# One-time parameter preparation (hoisted out of the per-call forward path):
# pad feature dims to 128 lanes and cast MXU inputs to bf16.
#   w1: (784, 64), b1: (64,), w2: (64, 10), b2: (10,)   [pre-transposed vs torch]
# ----------------------------------------------------------------------------
def prepare_params(w1, b1, w2, b2):
    in_f, hid = w1.shape
    _, out_f = w2.shape
    w1_p = jnp.pad(w1.astype(jnp.float32),
                   ((0, 0), (0, HID_P - hid))).astype(jnp.bfloat16)   # (784, 128)
    b1_p = jnp.pad(b1.astype(jnp.float32), (0, HID_P - hid)).reshape(1, HID_P)
    w2_p = jnp.pad(w2.astype(jnp.float32),
                   ((0, HID_P - hid), (0, OUT_P - out_f))).astype(jnp.bfloat16)
    b2_p = jnp.pad(b2.astype(jnp.float32), (0, OUT_P - out_f)).reshape(1, OUT_P)
    return w1_p, b1_p, w2_p, b2_p


def net_forward(x_img, w1_p, b1_p, w2_p, b2_p, *, hid, out_f, tb_max=2048):
    """Forward pass of `Net` (num_linear=2) using pre-padded params.

    Returns (log_probs, zs) mirroring PyTorch: zs = [x_img, fc1_out, fc2_out].
    fc1_out (zs[1]) is returned in bf16 by design (review: stored in reduced
    precision to halve its HBM stream); fc2_out is reconstructed in f32.
    """
    B = x_img.shape[0]
    in_f = w1_p.shape[0]          # 784

    # --- batch tiling: TB multiple of 16 (bf16 sublanes), >=2 grid steps when
    #     B > 16 so the 'parallel' axis shards across both v7x TensorCores. ---
    TB = min(tb_max, max(16, _round_up(_ceil_div(B, 2), 16)))
    Bp = _round_up(B, TB)
    grid = (Bp // TB,)

    # --- glue: flatten NCHW, cast to bf16 FIRST, then zero-pad the batch ---
    x_bf = x_img.reshape(B, in_f).astype(jnp.bfloat16)
    if Bp > B:
        x_bf = jnp.pad(x_bf, ((0, Bp - B), (0, 0)))                    # (Bp, 784)

    x_spec = pl.BlockSpec((TB, in_f), lambda i: (i, 0))
    resident = lambda shape: pl.BlockSpec(shape, lambda i: (0, 0))
    h1_spec = pl.BlockSpec((TB, HID_P), lambda i: (i, 0))
    logp_spec = pl.BlockSpec((TB, OUT_P), lambda i: (i, 0))
    lse_spec = pl.BlockSpec((TB, 1), lambda i: (i, 0))

    flops = 2 * Bp * (in_f * HID_P + HID_P * OUT_P)
    bytes_accessed = (Bp * in_f * 2                           # x (bf16)
                      + (in_f * HID_P + HID_P * OUT_P) * 2    # weights (bf16)
                      + (HID_P + OUT_P) * 4                   # biases (f32)
                      + Bp * (HID_P * 2 + OUT_P * 4 + 4))     # h1 bf16, logp f32, lse f32

    h1_pad, logp_pad, lse_pad = pl.pallas_call(
        functools.partial(_net_fwd_kernel, out_f=out_f),
        out_shape=(
            jax.ShapeDtypeStruct((Bp, HID_P), jnp.bfloat16),   # fc1 output (padded, bf16)
            jax.ShapeDtypeStruct((Bp, OUT_P), jnp.float32),    # log_softmax (padded)
            jax.ShapeDtypeStruct((Bp, 1), jnp.float32),        # m + logsumexp
        ),
        grid=grid,
        in_specs=[
            x_spec,
            resident((in_f, HID_P)),
            resident((1, HID_P)),
            resident((HID_P, OUT_P)),
            resident((1, OUT_P)),
        ],
        out_specs=(h1_spec, logp_spec, lse_spec),
        compiler_params=pltpu.CompilerParams(
            dimension_semantics=("parallel",),
            vmem_limit_bytes=32 * 1024 * 1024,
        ),
        cost_estimate=pl.CostEstimate(
            flops=flops,
            transcendentals=Bp * (OUT_P + 1),
            bytes_accessed=bytes_accessed,
        ),
    )(x_bf, w1_p, b1_p, w2_p, b2_p)

    # Slice away batch / lane padding to recover logical shapes.
    h1 = h1_pad[:B, :hid]                                  # (B, 64) bf16
    logp = logp_pad[:B, :out_f]                            # (B, 10) f32
    logits = logp + lse_pad[:B]                            # (B, 10) f32, = fc2 output

    zs = [x_img, h1, logits]
    return logp, zs


# ----------------------------------------------------------------------------
# Deterministic parameter initialization (matches PyTorch shapes / init scheme:
# kaiming_uniform(a=sqrt(5)) on (out, in) weight == U(-1/sqrt(fan_in), 1/sqrt(fan_in)),
# bias ~ U(-1/sqrt(fan_in), 1/sqrt(fan_in)).  Stored pre-transposed as (in, out).
# ----------------------------------------------------------------------------
def init_linear_params(key, in_features, out_features):
    kw, kb = jax.random.split(key)
    bound = 1.0 / math.sqrt(in_features)
    w = jax.random.uniform(kw, (in_features, out_features),
                           minval=-bound, maxval=bound, dtype=jnp.float32)
    b = jax.random.uniform(kb, (out_features,),
                           minval=-bound, maxval=bound, dtype=jnp.float32)
    return w, b


if __name__ == "__main__":
    key = jax.random.PRNGKey(0)
    k_x, k_fc1, k_fc2 = jax.random.split(key, 3)

    # Small MNIST-like batch, NCHW.
    B = 2
    x_img = jax.random.normal(k_x, (B, 1, 28, 28), dtype=jnp.float32)

    w1, b1 = init_linear_params(k_fc1, 28 * 28, 64)   # fc1: RobustLinear(784, 64)
    w2, b2 = init_linear_params(k_fc2, 64, 10)        # fc2: RobustLinear(64, 10)

    # Hoisted one-time padding/cast of the parameters (review item).
    w1_p, b1_p, w2_p, b2_p = prepare_params(w1, b1, w2, b2)

    fwd = jax.jit(functools.partial(net_forward, hid=64, out_f=10))
    logp, zs = fwd(x_img, w1_p, b1_p, w2_p, b2_p)
    jax.block_until_ready(logp)
    jax.block_until_ready(zs)

    # Sanity checks: shapes and log_softmax normalization.
    assert logp.shape == (B, 10)
    assert zs[0].shape == (B, 1, 28, 28)
    assert zs[1].shape == (B, 64)
    assert zs[2].shape == (B, 10)
    row_sums = jnp.sum(jnp.exp(logp), axis=1)
    assert bool(jnp.all(jnp.abs(row_sums - 1.0) < 1e-4))

    # Cross-check the padded/bf16 kernel against a plain-JAX f32 reference.
    x_ref = x_img.reshape(B, -1)
    h1_ref = x_ref @ w1 + b1
    logits_ref = h1_ref @ w2 + b2
    logp_ref = jax.nn.log_softmax(logits_ref, axis=1)
    assert bool(jnp.all(jnp.abs(logp - logp_ref) < 5e-2))                  # bf16 MXU tol
    assert bool(jnp.all(jnp.abs(zs[1].astype(jnp.float32) - h1_ref) < 5e-2))
    assert bool(jnp.all(jnp.abs(zs[2] - logits_ref) < 5e-2))

    print("KERNEL_OK")
</pallas_src>

<mosaic_0001>
module attributes {stable_mosaic.version = 11 : i64} {
  func.func @_net_fwd_kernel(%arg0: i32, %arg1: memref<16x784xbf16, #tpu.memory_space<vmem>>, %arg2: memref<784x128xbf16, #tpu.memory_space<vmem>>, %arg3: memref<1x128xf32, #tpu.memory_space<vmem>>, %arg4: memref<128x128xbf16, #tpu.memory_space<vmem>>, %arg5: memref<1x128xf32, #tpu.memory_space<vmem>>, %arg6: memref<16x128xbf16, #tpu.memory_space<vmem>>, %arg7: memref<16x128xf32, #tpu.memory_space<vmem>>, %arg8: memref<16x1xf32, #tpu.memory_space<vmem>>) attributes {dimension_semantics = [#tpu.dimension_semantics<parallel>], iteration_bounds = array<i64: 1>, scalar_prefetch = 0 : i64, scratch_operands = 0 : i64, tpu.core_type = #tpu.core_type<tc>, window_params = [{transform_indices = @transform_0, window_bounds = array<i64: 16, 784>}, {pipeline_mode = #tpu.pipeline_mode<synchronous>, transform_indices = @transform_1, window_bounds = array<i64: 784, 128>}, {pipeline_mode = #tpu.pipeline_mode<synchronous>, transform_indices = @transform_2, window_bounds = array<i64: 1, 128>}, {pipeline_mode = #tpu.pipeline_mode<synchronous>, transform_indices = @transform_3, window_bounds = array<i64: 128, 128>}, {pipeline_mode = #tpu.pipeline_mode<synchronous>, transform_indices = @transform_4, window_bounds = array<i64: 1, 128>}, {transform_indices = @transform_5, window_bounds = array<i64: 16, 128>}, {transform_indices = @transform_6, window_bounds = array<i64: 16, 128>}, {transform_indices = @transform_7, window_bounds = array<i64: 16, 1>}]} {
    %c0 = arith.constant 0 : index
    %c0_0 = arith.constant 0 : index
    %0 = vector.load %arg1[%c0, %c0_0] : memref<16x784xbf16, #tpu.memory_space<vmem>>, vector<16x784xbf16>
    %c0_1 = arith.constant 0 : index
    %c0_2 = arith.constant 0 : index
    %1 = vector.load %arg2[%c0_1, %c0_2] : memref<784x128xbf16, #tpu.memory_space<vmem>>, vector<784x128xbf16>
    %cst = arith.constant dense<0.000000e+00> : vector<16x128xf32>
    %2 = tpu.matmul %0, %1, %cst {dimension_numbers = #tpu.dot_dimension_numbers<[1], [0], [0], [1], [0, 0, 1, 1], [], []>} : vector<16x784xbf16>, vector<784x128xbf16>, vector<16x128xf32> -> vector<16x128xf32>
    %c0_3 = arith.constant 0 : index
    %c0_4 = arith.constant 0 : index
    %3 = vector.load %arg3[%c0_3, %c0_4] : memref<1x128xf32, #tpu.memory_space<vmem>>, vector<1x128xf32>
    %4 = vector.broadcast %3 : vector<1x128xf32> to vector<16x128xf32>
    %5 = arith.addf %2, %4 : vector<16x128xf32>
    %6 = arith.truncf %5 : vector<16x128xf32> to vector<16x128xbf16>
    %c0_5 = arith.constant 0 : index
    %c0_6 = arith.constant 0 : index
    %7 = vector.load %arg6[%c0_5, %c0_6] : memref<16x128xbf16, #tpu.memory_space<vmem>>, vector<16x128xbf16>
    tpu.vector_store %arg6[%c0_5, %c0_6], %6 {strides = array<i32>} : memref<16x128xbf16, #tpu.memory_space<vmem>>, vector<16x128xbf16>,
    %c0_7 = arith.constant 0 : index
    %c0_8 = arith.constant 0 : index
    %8 = vector.load %arg4[%c0_7, %c0_8] : memref<128x128xbf16, #tpu.memory_space<vmem>>, vector<128x128xbf16>
    %cst_9 = arith.constant dense<0.000000e+00> : vector<16x128xf32>
    %9 = tpu.matmul %6, %8, %cst_9 {dimension_numbers = #tpu.dot_dimension_numbers<[1], [0], [0], [1], [0, 0, 1, 1], [], []>} : vector<16x128xbf16>, vector<128x128xbf16>, vector<16x128xf32> -> vector<16x128xf32>
    %c0_10 = arith.constant 0 : index
    %c0_11 = arith.constant 0 : index
    %10 = vector.load %arg5[%c0_10, %c0_11] : memref<1x128xf32, #tpu.memory_space<vmem>>, vector<1x128xf32>
    %11 = vector.broadcast %10 : vector<1x128xf32> to vector<16x128xf32>
    %12 = arith.addf %9, %11 : vector<16x128xf32>
    %13 = tpu.iota {dimensions = array<i32: 1>} : vector<16x128xi32>
    %c10_i32 = arith.constant 10 : i32
    %14 = vector.broadcast %c10_i32 : i32 to vector<16x128xi32>
    %15 = arith.cmpi slt, %13, %14 : vector<16x128xi32>
    %cst_12 = arith.constant -1.000000e+30 : f32
    %16 = vector.broadcast %cst_12 : f32 to vector<16x128xf32>
    %17 = arith.select %15, %12, %16 : vector<16x128xi1>, vector<16x128xf32>
    %cst_13 = arith.constant dense<0xFF800000> : vector<16xf32>
    %18 = vector.multi_reduction <maximumf>, %17, %cst_13 [1] : vector<16x128xf32> to vector<16xf32>
    %19 = vector.shape_cast %18 : vector<16xf32> to vector<16x1xf32>
    %20 = vector.broadcast %19 : vector<16x1xf32> to vector<16x128xf32>
    %21 = arith.subf %17, %20 : vector<16x128xf32>
    %22 = math.exp %21 : vector<16x128xf32>
    %cst_14 = arith.constant dense<0.000000e+00> : vector<16xf32>
    %23 = vector.multi_reduction <add>, %22, %cst_14 [1] : vector<16x128xf32> to vector<16xf32>
    %24 = vector.shape_cast %23 : vector<16xf32> to vector<16x1xf32>
    %25 = math.log %24 : vector<16x1xf32>
    %26 = vector.broadcast %25 : vector<16x1xf32> to vector<16x128xf32>
    %27 = arith.subf %21, %26 : vector<16x128xf32>
    %c0_15 = arith.constant 0 : index
    %c0_16 = arith.constant 0 : index
    %28 = vector.load %arg7[%c0_15, %c0_16] : memref<16x128xf32, #tpu.memory_space<vmem>>, vector<16x128xf32>
    tpu.vector_store %arg7[%c0_15, %c0_16], %27 {strides = array<i32>} : memref<16x128xf32, #tpu.memory_space<vmem>>, vector<16x128xf32>,
    %29 = arith.addf %19, %25 : vector<16x1xf32>
    %c0_17 = arith.constant 0 : index
    %c0_18 = arith.constant 0 : index
    %30 = vector.load %arg8[%c0_17, %c0_18] : memref<16x1xf32, #tpu.memory_space<vmem>>, vector<16x1xf32>
    tpu.vector_store %arg8[%c0_17, %c0_18], %29 {strides = array<i32>} : memref<16x1xf32, #tpu.memory_space<vmem>>, vector<16x1xf32>,
    return
  }
  func.func @transform_0(%arg0: i32) -> (i32, i32) {
    %c0_i32 = arith.constant 0 : i32
    %c0_i32_0 = arith.constant 0 : i32
    return %arg0, %c0_i32 : i32, i32
  }
  func.func @transform_1(%arg0: i32) -> (i32, i32) {
    %c0_i32 = arith.constant 0 : i32
    %c0_i32_0 = arith.constant 0 : i32
    %c0_i32_1 = arith.constant 0 : i32
    return %c0_i32, %c0_i32_0 : i32, i32
  }
  func.func @transform_2(%arg0: i32) -> (i32, i32) {
    %c0_i32 = arith.constant 0 : i32
    %c0_i32_0 = arith.constant 0 : i32
    %c0_i32_1 = arith.constant 0 : i32
    return %c0_i32, %c0_i32_0 : i32, i32
  }
  func.func @transform_3(%arg0: i32) -> (i32, i32) {
    %c0_i32 = arith.constant 0 : i32
    %c0_i32_0 = arith.constant 0 : i32
    %c0_i32_1 = arith.constant 0 : i32
    return %c0_i32, %c0_i32_0 : i32, i32
  }
  func.func @transform_4(%arg0: i32) -> (i32, i32) {
    %c0_i32 = arith.constant 0 : i32
    %c0_i32_0 = arith.constant 0 : i32
    %c0_i32_1 = arith.constant 0 : i32
    return %c0_i32, %c0_i32_0 : i32, i32
  }
  func.func @transform_5(%arg0: i32) -> (i32, i32) {
    %c0_i32 = arith.constant 0 : i32
    %c0_i32_0 = arith.constant 0 : i32
    return %arg0, %c0_i32 : i32, i32
  }
  func.func @transform_6(%arg0: i32) -> (i32, i32) {
    %c0_i32 = arith.constant 0 : i32
    %c0_i32_0 = arith.constant 0 : i32
    return %arg0, %c0_i32 : i32, i32
  }
  func.func @transform_7(%arg0: i32) -> (i32, i32) {
    %c0_i32 = arith.constant 0 : i32
    %c0_i32_0 = arith.constant 0 : i32
    return %arg0, %c0_i32 : i32, i32
  }
}

</mosaic_0001>

<bundles_post_ra>
// kernel: net_forward.1
= control target key start
LH: loop header
LB: loop body
LE: loop exit
PB: predicated region body
PF: predicated region fallthrough
CT: control target
= control target key end

     0   :  { %13 = vsyncpa [#allocation3], 0  ;;  %s1096_s24 = smov [#allocation2]   ;;  %s1223_s0 = inlined_call_operand.vmem [shape: bf16[16,784], index: 0, kind: input, shape index: {}]   ;;  %s1224_s1 = inlined_call_operand.hbm [shape: bf16[784,128], index: 1, kind: input, shape index: {}]   ;;  %s1225_s2 = inlined_call_operand.vmem [shape: f32[1,128], index: 2, kind: input, shape index: {}]   ;;  %s1226_s3 = inlined_call_operand.vmem [shape: bf16[128,128], index: 3, kind: input, shape index: {}]   ;;  %s1227_s4 = inlined_call_operand.vmem [shape: f32[1,128], index: 4, kind: input, shape index: {}]   ;;  %s1228_s5 = inlined_call_operand.vmem [shape: bf16[16,128], index: 5, kind: output, shape index: {0}]   ;;  %s1229_s6 = inlined_call_operand.vmem [shape: f32[16,128], index: 6, kind: output, shape index: {1}]   ;;  %s1230_s7 = inlined_call_operand.vmem [shape: f32[16,1], index: 7, kind: output, shape index: {2}]  }
   0x1   :  { %s21_s25 = sshll.u32 %s1096_s24, 4  ;;  %s22_s25 = int_to_ptr.vmem [resolvable:$true] %s21_s25 }
   0x2   :  { %s1082_s26 = scalar_lea.vmem %s22_s25, 6272  ;;  %p1087_p1 = scmp.lt.s32.totalorder %s22_s25, %s22_s25 }
   0x3   :  { %p1083_p0 = scmp.ne.s32.totalorder %s22_s25, %s1082_s26  ;;  %p1088_p2 = scmp.lt.s32.totalorder %s1082_s26, %s1082_s26 }
   0x5   :  { %p1089_p3 = por %p1088_p2, %p1087_p1 }
   0x7   :  { %p1090_p4 = pnand %p1089_p3, %p1083_p0 }
   0x9   :  { %1093 = shalt.err (!%p1090_p4)
}
   0xa   :  { %s1097_s27 = smov 64   ;;  %s1098_s28 = smov 4  }
   0xb   :  { %27 = dma.hbm_to_vmem [thread:$0]  %s1224_s1, 6272, %s22_s25, [#allocation3], %s1097_s27, %s1097_s27, %s1098_s28  }
   0xc   :  { %1094 = dma.done.wait [#allocation3], 6272  }
   0xd   :  { %1095 = vsyncadd [#allocation3], 4294961024  ;;  %v999_v0 = vld [vmem:[#allocation2 + $0x78] sm:$0xff]   ;;  %v1003_v4 = vld [vmem:[#allocation2 + $0x70] sm:$0xff]   ;;  %v1099_v38 = vmov 0.0   ;;  %vm1100_vm0 = vmmov 0  }
   0xe   :  { %v1000_v1 = vld [vmem:[#allocation2 + $0x38] sm:$0xff]   ;;  %891 = vmatprep.subr.bf16.mxu0 %v999_v0  ;;  %v1004_v5 = vld [vmem:[#allocation2 + $0x30] sm:$0xff]   ;;  %v1007_v8 = vld [vmem:[#allocation2 + $0x68] sm:$0xff]   ;;  %vm480_vm1 = vcmask 130048   ;;  %vm799_vm3 = vcmask 7168  }
   0xf   :  { %v1001_v2 = vld [vmem:[#allocation2 + $0xf8] sm:$0xff]   ;;  %892 = vmatpush3.bf16.msra.mxu0 %v1000_v1  ;;  %v1005_v6 = vld [vmem:[#allocation2 + $0xf0] sm:$0xff]   ;;  %v1008_v9 = vld [vmem:[#allocation2 + $0x28] sm:$0xff]  }
  0x10   :  { %v1002_v3 = vld [vmem:[#allocation2 + $0xb8] sm:$0xff]   ;;  %913 = vmatprep.subr.bf16.mxu1 %v1001_v2  ;;  %893 = vmatprep.subr.bf16.mxu0 %v1003_v4  ;;  %v1006_v7 = vld [vmem:[#allocation2 + $0xb0] sm:$0xff]   ;;  %v1009_v10 = vld [vmem:[#allocation2 + $0xe8] sm:$0xff]  }
  0x11   :  { %914 = vmatpush3.bf16.msra.mxu1 %v1002_v3  ;;  %v1010_v11 = vld [vmem:[#allocation2 + $0xa8] sm:$0xff]   ;;  %v1011_v12 = vld [vmem:[#allocation2 + $0x60] sm:$0xff]   ;;  %v1015_v16 = vld [vmem:[#allocation2 + $0x58] sm:$0xff]  }
  0x12   :  { %915 = vmatprep.subr.bf16.mxu1 %v1005_v6  ;;  %v1012_v13 = vld [vmem:[#allocation2 + $0x20] sm:$0xff]   ;;  %v1016_v17 = vld [vmem:[#allocation2 + $0x18] sm:$0xff]   ;;  %v1019_v20 = vld [vmem:[#allocation2 + $0x50] sm:$0xff]  }
  0x13   :  { %894 = vmatpush3.bf16.msra.mxu0 %v1004_v5  ;;  %v1013_v14 = vld [vmem:[#allocation2 + $0xe0] sm:$0xff]   ;;  %v1017_v18 = vld [vmem:[#allocation2 + $0xd8] sm:$0xff]   ;;  %v1020_v21 = vld [vmem:[#allocation2 + $0x10] sm:$0xff]  }
  0x14   :  { %895 = vmatprep.subr.bf16.mxu0 %v1007_v8  ;;  %v1014_v15 = vld [vmem:[#allocation2 + $0xa0] sm:$0xff]   ;;  %v1018_v19 = vld [vmem:[#allocation2 + $0x98] sm:$0xff]   ;;  %v1021_v22 = vld [vmem:[#allocation2 + $0xd0] sm:$0xff]  }
  0x15   :  { %916 = vmatpush3.bf16.msra.mxu1 %v1006_v7  ;;  %v1022_v23 = vld [vmem:[#allocation2 + $0x90] sm:$0xff]   ;;  %v1023_v24 = vld [vmem:[#allocation2 + $0x48] sm:$0xff]   ;;  %v1027_v28 = vld [vmem:[#allocation2 + $0x40] sm:$0xff]  }
  0x16   :  { %917 = vmatprep.subr.bf16.mxu1 %v1009_v10  ;;  %v1024_v25 = vld [vmem:[#allocation2 + $0x8] sm:$0xff]   ;;  %v1028_v29 = vld [vmem:[#allocation2] sm:$0xff]   ;;  %v1034_v34 = vld [vmem:[#allocation2 + $0x178] sm:$0xff]  }
  0x17   :  { %896 = vmatpush3.bf16.msra.mxu0 %v1008_v9  ;;  %v1025_v26 = vld [vmem:[#allocation2 + $0xc8] sm:$0xff]   ;;  %v1029_v30 = vld [vmem:[#allocation2 + $0xc0] sm:$0xff]   ;;  %v1038_v37 = vld [vmem:[#allocation2 + $0x138] sm:$0xff]  }
  0x18   :  { %897 = vmatprep.subr.bf16.mxu0 %v1011_v12  ;;  %v1026_v27 = vld [vmem:[#allocation2 + $0x88] sm:$0xff]   ;;  %v1030_v31 = vld [vmem:[%s1223_s0] ss:$28 sps:$4 sm:$0xff]   ;;  %v1039_v39 = vld [vmem:[#allocation2 + $0x170] sm:$0xff]  }
  0x19   :  { %918 = vmatpush3.bf16.msra.mxu1 %v1010_v11  ;;  %v1032_v32 = vld [vmem:[%s1223_s0 + $0x4] ss:$28 sps:$4 sm:$0xff]   ;;  %v1037_v36 = vld [vmem:[%s1223_s0 + $0xc] ss:$28 sps:$4 sm:$0xff]   ;;  %v1040_v40 = vld [vmem:[#allocation2 + $0x130] sm:$0xff]  }
  0x1a   :  { %919 = vmatprep.subr.bf16.mxu1 %v1013_v14  ;;  %v1033_v33 = vld [vmem:[#allocation2 + $0x80] sm:$0xff]   ;;  %516 = vmatprep.mubr.bf16.mxu0 %v1032_v32  ;;  %v1041_v41 = vld [vmem:[#allocation2 + $0x168] sm:$0xff]   ;;  %v1045_v45 = vld [vmem:[#allocation2 + $0x158] sm:$0xff]  }
  0x1b   :  { %898 = vmatpush3.bf16.msra.mxu0 %v1012_v13  ;;  %v1035_v35 = vld [vmem:[%s1223_s0 + $0x8] ss:$28 sps:$4 sm:$0xff]   ;;  %557 = vmatprep.mubr.bf16.mxu1 %v1037_v36  ;;  %v1046_v46 = vld [vmem:[#allocation2 + $0x118] sm:$0xff]   ;;  %v1047_v47 = vld [vmem:[#allocation2 + $0x150] sm:$0xff]  }
  0x1c   :  { %899 = vmatprep.subr.bf16.mxu0 %v1015_v16  ;;  %v1042_v42 = vld [vmem:[#allocation2 + $0x128] sm:$0xff]   ;;  %v1043_v43 = vld [vmem:[#allocation2 + $0x160] sm:$0xff]   ;;  %v1048_v49 = vld [vmem:[#allocation2 + $0x110] sm:$0xff]  }
  0x1d   :  { %920 = vmatpush3.bf16.msra.mxu1 %v1014_v15  ;;  %v1044_v44 = vld [vmem:[#allocation2 + $0x120] sm:$0xff]   ;;  %v1056_v50 = vld [vmem:[%s1223_s0 + $0x14] ss:$28 sps:$4 sm:$0xff]   ;;  %v1049_v51 = vld [vmem:[#allocation2 + $0x148] sm:$0xff]  }
  0x1e   :  { %921 = vmatprep.subr.bf16.mxu1 %v1017_v18  ;;  %v1053_v48 = vld [vmem:[#allocation2 + $0x180] sm:$0xff]   ;;  %v1057_v52 = vld [vmem:[%s1223_s0 + $0x18] ss:$28 sps:$4 sm:$0xff]   ;;  %v1050_v53 = vld [vmem:[#allocation2 + $0x108] sm:$0xff]  }
  0x1f   :  { %900 = vmatpush3.bf16.msra.mxu0 %v1016_v17  ;;  %v1051_v54 = vld [vmem:[#allocation2 + $0x140] sm:$0xff]   ;;  %v1054_v56 = vld [vmem:[%s1223_s0 + $0x10] ss:$28 sps:$4 sm:$0xff]   ;;  %v1058_v57 = vld [vmem:[%s1226_s3 + $0x38] sm:$0xff]  }
  0x20   :  { %901 = vmatprep.subr.bf16.mxu0 %v1019_v20  ;;  %v1052_v55 = vld [vmem:[#allocation2 + $0x100] sm:$0xff]   ;;  %v1059_v58 = vld [vmem:[%s1226_s3 + $0x30] sm:$0xff]   ;;  %v1060_v59 = vld [vmem:[%s1226_s3 + $0x28] sm:$0xff]  }
  0x21   :  { %922 = vmatpush3.bf16.msra.mxu1 %v1018_v19  ;;  %v1061_v60 = vld [vmem:[%s1226_s3 + $0x20] sm:$0xff]   ;;  %v1062_v61 = vld [vmem:[%s1226_s3 + $0x18] sm:$0xff]   ;;  %v1063_v62 = vld [vmem:[%s1226_s3 + $0x10] sm:$0xff]  }
  0x22   :  { %923 = vmatprep.subr.bf16.mxu1 %v1021_v22  ;;  %v1064_v63 = vld [vmem:[%s1226_s3 + $0x8] sm:$0xff]   ;;  %v1065_v0 = vld [vmem:[%s1226_s3] sm:$0xff]  }
  0x23   :  { %902 = vmatpush3.bf16.msra.mxu0 %v1020_v21  ;;  %v815_v14 = vld [vmem:[%s1225_s2] ss:$0 sm:$0xff] }
  0x24   :  { %903 = vmatprep.subr.bf16.mxu0 %v1023_v24 }
  0x25   :  { %924 = vmatpush3.bf16.msra.mxu1 %v1022_v23 }
  0x26   :  { %925 = vmatprep.subr.bf16.mxu1 %v1025_v26 }
  0x27   :  { %904 = vmatpush3.bf16.msra.mxu0 %v1024_v25 }
  0x28   :  { %905 = vmatprep.subr.bf16.mxu0 %v1027_v28 }
  0x29   :  { %926 = vmatpush3.bf16.msra.mxu1 %v1026_v27 }
  0x2a   :  { %927 = vmatprep.subr.bf16.mxu1 %v1029_v30 }
  0x2b   :  { %906 = vmatpush3.bf16.msra.mxu0 %v1028_v29 }
  0x2c   :  { %935 = vmatprep.subr.bf16.mxu0 %v1034_v34 }
  0x2d   :  { %928 = vmatpush3.bf16.msra.mxu1 %v1033_v33  ;;  %v770_v33 = vlaneseq }
  0x2e   :  { %517 = vmatmul.mubr.bf16.vlgmr.msra.gmra.mxu0 %v1030_v31  ;;  %968 = vmatprep.subr.bf16.mxu1 %v1099_v38 }
  0x2f   :  { %936 = vmatpush3.bf16.msra.mxu0 %v1038_v37  ;;  %598 = vmatprep.mubr.bf16.mxu0 %v1056_v50  ;;  %v771_v34 = vand.u32 127, %v770_v33 }
  0x30   :  { %558 = vmatmul.mubr.bf16.vlgmr.msra.gmra.mxu1 %v1035_v35  ;;  %937 = vmatprep.subr.bf16.mxu0 %v1039_v39  ;;  %v875_v35 = vld [vmem:[%s1227_s4] ss:$0 sm:$0xff] }
  0x31   :  { %970 = vmatprep.mubr.msk.bf16.mxu1 %vm1100_vm0, %v1099_v38  ;;  %969 = vmatpush3.bf16.msra.mxu1 %v1053_v48  ;;  %vm772_vm2 = vcmp.lt.s32.totalorder %v771_v34, 10 }
  0x32   :  { %974 = vmatprep.subr.bf16.mxu1 %v1099_v38 }
  0x33   :  { %938 = vmatpush3.bf16.msra.mxu0 %v1040_v40 }
  0x34   :  { %939 = vmatprep.subr.bf16.mxu0 %v1041_v41 }
  0x37   :  { %940 = vmatpush3.bf16.msra.mxu0 %v1042_v42 }
  0x38   :  { %941 = vmatprep.subr.bf16.mxu0 %v1043_v43  ;;  %971 = vmatmul.mubr.msk.bf16.vlgmr.msra.gmra.mxu1 %vm480_vm1, %v1057_v52 }
  0x39   :  { %990 = vmatprep.mubr.msk.bf16.mxu1 %vm1100_vm0, %v1099_v38  ;;  %975 = vmatpush3.bf16.msra.mxu1 %v1058_v57 }
  0x3a   :  { %976 = vmatprep.subr.bf16.mxu1 %v1099_v38 }
  0x3b   :  { %942 = vmatpush3.bf16.msra.mxu0 %v1044_v44 }
  0x3c   :  { %943 = vmatprep.subr.bf16.mxu0 %v1045_v45 }
  0x3d   :  { %977 = vmatpush3.bf16.msra.mxu1 %v1059_v58 }
  0x3e   :  { %978 = vmatprep.subr.bf16.mxu1 %v1099_v38 }
  0x3f   :  { %944 = vmatpush3.bf16.msra.mxu0 %v1046_v46 }
  0x40   :  { %945 = vmatprep.subr.bf16.mxu0 %v1047_v47 }
  0x41   :  { %979 = vmatpush3.bf16.msra.mxu1 %v1060_v59 }
  0x42   :  { %980 = vmatprep.subr.bf16.mxu1 %v1099_v38 }
  0x43   :  { %946 = vmatpush3.bf16.msra.mxu0 %v1048_v49 }
  0x44   :  { %947 = vmatprep.subr.bf16.mxu0 %v1049_v51 }
  0x45   :  { %981 = vmatpush3.bf16.msra.mxu1 %v1061_v60 }
  0x46   :  { %982 = vmatprep.subr.bf16.mxu1 %v1099_v38 }
  0x47   :  { %948 = vmatpush3.bf16.msra.mxu0 %v1050_v53 }
  0x48   :  { %949 = vmatprep.subr.bf16.mxu0 %v1051_v54 }
  0x49   :  { %983 = vmatpush3.bf16.msra.mxu1 %v1062_v61 }
  0x4a   :  { %984 = vmatprep.subr.bf16.mxu1 %v1099_v38 }
  0x4b   :  { %950 = vmatpush3.bf16.msra.mxu0 %v1052_v55 }
  0x4d   :  { %985 = vmatpush3.bf16.msra.mxu1 %v1063_v62 }
  0x4e   :  { %599 = vmatmul.mubr.bf16.vlgmr.msra.gmra.mxu0 %v1054_v56  ;;  %986 = vmatprep.subr.bf16.mxu1 %v1099_v38 }
  0x51   :  { %987 = vmatpush3.bf16.msra.mxu1 %v1064_v63 }
  0x52   :  { %988 = vmatprep.subr.bf16.mxu1 %v1099_v38 }
  0x55   :  { %989 = vmatpush3.bf16.msra.mxu1 %v1065_v0 }
  0xee   :  { %v907_v4 = vpop.f32.mrf.mxu0 }
  0xf0   :  { %v929_v1 = vpop.f32.mrf.mxu1  ;;  %v908_v7 = vpop.f32.mrf.mxu0 }
  0xf1   :  { %v909_v13 = vadd.f32 %v908_v7, %v907_v4 }
  0xf2   :  { %v930_v2 = vpop.f32.mrf.mxu1  ;;  %v910_v10 = vpop.f32.mrf.mxu0 }
  0xf3   :  { %v519_v17 = vadd.f32 %v909_v13, %v815_v14  ;;  %v931_v18 = vadd.f32 %v930_v2, %v929_v1 }
  0xf4   :  { %v932_v3 = vpop.f32.mrf.mxu1  ;;  %v911_v12 = vpop.f32.mrf.mxu0 }
  0xf5   :  { %v912_v15 = vadd.f32 %v911_v12, %v910_v10  ;;  %v560_v24 = vadd.f32 %v931_v18, %v519_v17 }
  0xf6   :  { %v933_v5 = vpop.f32.mrf.mxu1 }
  0xf7   :  { %v522_v20 = vadd.f32 %v912_v15, %v815_v14  ;;  %v934_v21 = vadd.f32 %v933_v5, %v932_v3 }
  0xf8   :  { %v641_v6 = vpop.f32.mrf.mxu1 }
  0xf9   :  { %v563_v26 = vadd.f32 %v934_v21, %v522_v20 }
  0xfa   :  { %v972_v8 = vpop.f32.mrf.mxu1 }
  0xfc   :  { %v644_v9 = vpop.f32.mrf.mxu1 }
  0xfe   :  { %v973_v11 = vpop.f32.mrf.mxu1 }
 0x10e   :  { %v951_v16 = vpop.f32.mrf.mxu0 }
 0x110   :  { %v952_v19 = vpop.f32.mrf.mxu0 }
 0x111   :  { %v953_v22 = vadd.f32 %v952_v19, %v951_v16 }
 0x112   :  { %v954_v23 = vpop.f32.mrf.mxu0 }
 0x113   :  { %v601_v27 = vadd.f32 %v953_v22, %v560_v24 }
 0x114   :  { %v955_v25 = vpop.f32.mrf.mxu0 }
 0x115   :  { %v956_v28 = vadd.f32 %v955_v25, %v954_v23  ;;  %v642_v30 = vadd.f32 %v641_v6, %v601_v27 }
 0x117   :  { %v604_v29 = vadd.f32 %v956_v28, %v563_v26 }
 0x119   :  { %v645_v31 = vadd.f32 %v644_v9, %v604_v29 }
 0x11b   :  { %v648_v32 = vpack.c.bf16 %v645_v31, %v642_v30 }
 0x11d   :  { %890 = vst [vmem:[%s1228_s5] sm:$0xff] %v648_v32   ;;  %991 = vmatmul.mubr.bf16.vlgmr.msra.gmra.mxu1 %v648_v32 }
 0x1dd   :  { %v763_v36 = vpop.f32.mrf.mxu1 }
 0x1de   :  { %v764_v37 = vadd.f32 %v875_v35, %v763_v36 }
 0x1df   :  { %v992_v38 = vpop.f32.mrf.mxu1 }
 0x1e0   :  { %v773_v39 = vsel %vm772_vm2, %v764_v37, -1e+30 }
 0x1e1   :  { %775 = vmax.xlane.f32.xlu0 %v773_v39  ;;  %v766_v40 = vpop.f32.mrf.mxu1 }
 0x1e2   :  { %v767_v41 = vadd.f32 %v875_v35, %v766_v40 }
 0x1e3   :  { %v993_v42 = vpop.f32.mrf.mxu1 }
 0x1e4   :  { %v774_v43 = vsel %vm772_vm2, %v767_v41, -1e+30 }
 0x1e5   :  { %777 = vmax.xlane.f32.xlu0 %v774_v43 }
 0x26a   :  { %v776_v44 = vpop.xlane.xlu0 %775 }
 0x26b   :  { %v779_v45 = vsub.f32 %v773_v39, %v776_v44 }
 0x26d   :  { %v781_v46 = vmul.f32 1.442695, %v779_v45 }
 0x26e   :  { %v778_v47 = vpop.xlane.xlu0 %777 }
 0x26f   :  { %v780_v48 = vsub.f32 %v774_v43, %v778_v47  ;;  %1066 = vpow2.f32 %v781_v46 }
 0x271   :  { %v783_v49 = vmul.f32 1.442695, %v780_v48 }
 0x273   :  { %1068 = vpow2.f32 %v783_v49 }
 0x27c   :  { %v1067_v50 = vpop.eup %1066 }
 0x27d   :  { %785 = vadd.xlane.f32.xlu1 %v1067_v50 }
 0x280   :  { %v1069_v51 = vpop.eup %1068 }
 0x281   :  { %787 = vadd.xlane.f32.xlu1 %v1069_v51 }
 0x306   :  { %v786_v52 = vpop.xlane.xlu1 %785 }
 0x307   :  { %1070 = vlog2.f32 %v786_v52 }
 0x30a   :  { %v788_v53 = vpop.xlane.xlu1 %787 }
 0x30b   :  { %1072 = vlog2.f32 %v788_v53 }
 0x314   :  { %v1071_v54 = vpop.eup %1070 }
 0x315   :  { %v790_v55 = vmul.f32 0.6931472, %v1071_v54 }
 0x317   :  { %v793_v56 = vsub.f32 %v779_v45, %v790_v55  ;;  %v797_v57 = vadd.f32 %v790_v55, %v776_v44 }
 0x318   :  { %v1073_v58 = vpop.eup %1072 }
 0x319   :  { %795 = vst [vmem:[%s1229_s6] sm:$0xff] %v793_v56  ;;  %800 = vst.msk [vmem:[%s1230_s7] sm:$0xff] %vm799_vm3, %v797_v57  ;;  %v792_v59 = vmul.f32 0.6931472, %v1073_v58 }
 0x31b   :  { %v794_v60 = vsub.f32 %v780_v48, %v792_v59  ;;  %v798_v61 = vadd.f32 %v792_v59, %v778_v47 }
 0x31d   :  { %796 = vst [vmem:[%s1229_s6 + $0x8] sm:$0xff] %v794_v60  ;;  %801 = vst.msk [vmem:[%s1230_s7 + $0x8] sm:$0xff] %vm799_vm3, %v798_v61 }
 0x31e   :  { %814 = vsyncpa [#allocation3], 1 }

</bundles_post_ra>
